<compile_context>
chip_gen: v7x
topology: tpu7x:2x2x1
jax: 0.10.0
libtpu: 0.0.40
codegen_flags: <defaults>
</compile_context>

<pallas_src>
import jax
import jax.numpy as jnp
from jax.experimental import pallas as pl
from jax.experimental.pallas import tpu as pltpu


def _make_shuffle_kernel(groups: int):
    def kernel(x_ref, o_ref):
        # x_ref: (groups, TC, HW)   o_ref: (TC, groups*HW)
        # Single dense store per 8-row chunk; the g > 0 slabs land at lane
        # offset g*HW via the concatenate (XLU rotate, co-issued).
        o_ref[...] = jnp.concatenate([x_ref[g] for g in range(groups)], axis=-1)

    return kernel


def _pick_channel_tile(C: int, hw: int, groups: int, itemsize: int) -> int:
    """Channel tile: >= 2 blocks when legal (v7x megacore + pipeline overlap),
    few grid steps, and a double-buffered in+out block well under VMEM."""
    if C % 2 == 0 and (C // 2) % 8 == 0:
        tc = C // 2            # e.g. C=352 -> TC=176 -> grid (N, 2)
    else:
        tc = C                 # full dim is always a legal trailing block dim

    out_lanes = -(-(groups * hw) // 128) * 128
    in_lanes = -(-hw // 128) * 128

    def block_bytes(t):
        # (input + output) block, double-buffered by the auto-pipeline.
        return 2 * (groups * t * in_lanes + t * out_lanes) * itemsize

    # For much larger stages keep shrinking so blocks stay comfortably small.
    while tc % 2 == 0 and (tc // 2) % 8 == 0 and block_bytes(tc) > (8 << 20):
        tc //= 2
    return tc


def channel_shuffle(x: jax.Array, groups: int = 2) -> jax.Array:
    """Equivalent of x.view(N, groups, C, H, W).transpose(1, 2) -> (N, C, groups, H, W)."""
    N, CH, H, W = x.shape
    assert CH % groups == 0
    C = CH // groups
    HW = H * W

    tc = _pick_channel_tile(C, HW, groups, jnp.dtype(x.dtype).itemsize)
    assert C % tc == 0
    n_cblk = C // tc

    # Free (contiguous) reshape: channels split into (groups, C), spatial flattened.
    x4 = x.reshape(N, groups, C, HW)

    out = pl.pallas_call(
        _make_shuffle_kernel(groups),
        out_shape=jax.ShapeDtypeStruct((N, C, groups * HW), x.dtype),
        grid=(N, n_cblk),
        in_specs=[
            # (groups, tc, HW) slab per (batch, channel-block); batch dim squeezed.
            pl.BlockSpec((None, groups, tc, HW), lambda n, cb: (n, 0, cb, 0)),
        ],
        # Lane-dense output rows of width groups*HW; reshape back below is free.
        out_specs=pl.BlockSpec((None, tc, groups * HW), lambda n, cb: (n, cb, 0)),
        compiler_params=pltpu.CompilerParams(
            dimension_semantics=("parallel", "parallel"),
        ),
    )(x4)

    # Free (contiguous) reshape to the module's output layout.
    return out.reshape(N, C, groups, H, W)


if __name__ == "__main__":
    # Shapes from the module: x352 = [1, 704, 7, 7]; view(1, 2, 352, 7, 7).transpose(1, 2).
    N, CH, H, W = 1, 704, 7, 7
    groups = 2
    C = CH // groups

    key = jax.random.PRNGKey(0)
    x = jax.random.normal(key, (N, CH, H, W), dtype=jnp.float32)

    y = channel_shuffle(x, groups=groups)
    y = jax.block_until_ready(y)

    # Reference: exact PyTorch semantics via jnp.
    ref = jnp.transpose(x.reshape(N, groups, C, H, W), (0, 2, 1, 3, 4))

    assert y.shape == (N, C, groups, H, W), y.shape
    assert jnp.array_equal(y, ref), "mismatch vs reference channel shuffle"

    print("KERNEL_OK")
</pallas_src>

<mosaic_0001>
module attributes {stable_mosaic.version = 11 : i64} {
  func.func @kernel(%arg0: i32, %arg1: i32, %arg2: memref<1x2x176x49xf32, #tpu.memory_space<vmem>>, %arg3: memref<1x176x98xf32, #tpu.memory_space<vmem>>) attributes {dimension_semantics = [#tpu.dimension_semantics<parallel>, #tpu.dimension_semantics<parallel>], iteration_bounds = array<i64: 1, 2>, scalar_prefetch = 0 : i64, scratch_operands = 0 : i64, tpu.core_type = #tpu.core_type<tc>, window_params = [{transform_indices = @transform_0, window_bounds = array<i64: 1, 2, 176, 49>}, {transform_indices = @transform_1, window_bounds = array<i64: 1, 176, 98>}]} {
    %c0 = arith.constant 0 : index
    %c0_0 = arith.constant 0 : index
    %c0_1 = arith.constant 0 : index
    %c0_2 = arith.constant 0 : index
    %0 = vector.load %arg2[%c0, %c0_0, %c0_1, %c0_2] : memref<1x2x176x49xf32, #tpu.memory_space<vmem>>, vector<1x1x176x49xf32>
    %1 = vector.shape_cast %0 : vector<1x1x176x49xf32> to vector<176x49xf32>
    %c0_3 = arith.constant 0 : index
    %c1 = arith.constant 1 : index
    %c0_4 = arith.constant 0 : index
    %c0_5 = arith.constant 0 : index
    %2 = vector.load %arg2[%c0_3, %c1, %c0_4, %c0_5] : memref<1x2x176x49xf32, #tpu.memory_space<vmem>>, vector<1x1x176x49xf32>
    %3 = vector.shape_cast %2 : vector<1x1x176x49xf32> to vector<176x49xf32>
    %4 = tpu.concatenate %1, %3 in 1 : vector<176x49xf32>, vector<176x49xf32> -> vector<176x98xf32>
    %c0_6 = arith.constant 0 : index
    %c0_7 = arith.constant 0 : index
    %c0_8 = arith.constant 0 : index
    %5 = vector.load %arg3[%c0_6, %c0_7, %c0_8] : memref<1x176x98xf32, #tpu.memory_space<vmem>>, vector<1x176x98xf32>
    %6 = vector.shape_cast %5 : vector<1x176x98xf32> to vector<176x98xf32>
    %7 = vector.shape_cast %4 : vector<176x98xf32> to vector<1x176x98xf32>
    tpu.vector_store %arg3[%c0_6, %c0_7, %c0_8], %7 {strides = array<i32>} : memref<1x176x98xf32, #tpu.memory_space<vmem>>, vector<1x176x98xf32>,
    return
  }
  func.func @transform_0(%arg0: i32, %arg1: i32) -> (i32, i32, i32, i32) {
    %c0_i32 = arith.constant 0 : i32
    %c0_i32_0 = arith.constant 0 : i32
    %c0_i32_1 = arith.constant 0 : i32
    return %arg0, %c0_i32, %arg1, %c0_i32_0 : i32, i32, i32, i32
  }
  func.func @transform_1(%arg0: i32, %arg1: i32) -> (i32, i32, i32) {
    %c0_i32 = arith.constant 0 : i32
    %c0_i32_0 = arith.constant 0 : i32
    return %arg0, %arg1, %c0_i32 : i32, i32, i32
  }
}

</mosaic_0001>

<bundles_post_ra>
// kernel: tpu_custom_call.1
= control target key start
LH: loop header
LB: loop body
LE: loop exit
PB: predicated region body
PF: predicated region fallthrough
CT: control target
= control target key end

     0   :  { %s747_s6 = smov 0   ;;  %s749_s7 = smov 0   ;;  %s1040_s0 = inlined_call_operand.vmem [shape: f32[1,2,352,49], index: 0, kind: input, shape index: {}]   ;;  %s1041_s1 = inlined_call_operand.vmem [shape: f32[1,352,98], index: 1, kind: output, shape index: {}]  }
   0x1   :  { %s751_s8 = smov 0   ;;  %s753_s9 = smov 0  }
   0x2   :  { %s755_s10 = smov 0  }
   0x3 LB: > { %s20_s11 = sadd.s32 1, %s730_s9  ;;  %p39_p1 = scmp.ne.s32.totalorder %s722_s7, %s718_s6  ;;  %s734_s10 = sphi %s755_s10, %s11_s10   ;;  %s730_s9 = sphi %s753_s9, %s1045_s9   ;;  %s726_s8 = sphi %s751_s8, %s1044_s8   ;;  %s722_s7 = sphi %s749_s7, %s1043_s7   ;;  %s718_s6 = sphi %s747_s6, %s1042_s6  }
   0x4   : > { %p21_p0 = scmp.ge.s32.totalorder %s20_s11, 2  ;;  %p40_p2 = scmp.eq.s32.totalorder %s734_s10, 0 }
   0x5   : > { %s32_s13 = sadd.s32 1, %s722_s7  ;;  %p624_p5 = scmp.ge.s32.totalorder %s734_s10, 2 }
   0x6   : > { %s1047_s11 = smov (%p21_p0, %s20_s11), 0  ;;  %p41_p3 = por %p40_p2, %p39_p1 }
   0x7   : > { %s28_s12 = ssub.s32 %s730_s9, %s1047_s11  ;;  %93 = sbr.rel (%p624_p5) target bundleno = 41 (0x29), region = 16 }
   0x8   : > { %p30_p4 = scmp.eq.s32.totalorder %s28_s12, 0 }
   0xa   : > { %s782_s14 = scalar_select %p30_p4, %s722_s7, %s32_s13  }
   0xe   : > { %96 = sbr.rel (!%p41_p3) target bundleno = 41 (0x29), region = 20  ;;  %s98_s15 = sand.u32 (%p41_p3), 1, %s722_s7  }
   0xf   : > { %s652_s16 = smul.u32 (%p41_p3), 176, %s730_s9 }
  0x10   : > { %s653_s17 = smul.u32 (%p41_p3), 352, %s98_s15 }
  0x11   : > { %s790_s20 = scalar_lea.vmem (%p41_p3), %s1040_s0, %s652_s16 }
  0x12   : > { %v219_v0 = vld [vmem:[%s790_s20] sm:$0xff] (%p41_p3)  ;;  %v221_v1 = vld [vmem:[%s790_s20 + $0x8] sm:$0xff] (%p41_p3)  ;;  %v223_v2 = vld [vmem:[%s790_s20 + $0x10] sm:$0xff] (%p41_p3)  ;;  %s795_s21 = scalar_lea.vmem (%p41_p3), [#allocation2], %s653_s17 }
  0x13   : > { %220 = vst [vmem:[%s795_s21] sm:$0xff] (%p41_p3), %v219_v0  ;;  %222 = vst [vmem:[%s795_s21 + $0x8] sm:$0xff] (%p41_p3), %v221_v1  ;;  %v225_v3 = vld [vmem:[%s790_s20 + $0x18] sm:$0xff] (%p41_p3)  ;;  %v227_v4 = vld [vmem:[%s790_s20 + $0x20] sm:$0xff] (%p41_p3) }
  0x14   : > { %224 = vst [vmem:[%s795_s21 + $0x10] sm:$0xff] (%p41_p3), %v223_v2  ;;  %v229_v5 = vld [vmem:[%s790_s20 + $0x28] sm:$0xff] (%p41_p3)  ;;  %226 = vst [vmem:[%s795_s21 + $0x18] sm:$0xff] (%p41_p3), %v225_v3  ;;  %v231_v6 = vld [vmem:[%s790_s20 + $0x30] sm:$0xff] (%p41_p3) }
  0x15   : > { %228 = vst [vmem:[%s795_s21 + $0x20] sm:$0xff] %v227_v4  ;;  %230 = vst [vmem:[%s795_s21 + $0x28] sm:$0xff] %v229_v5  ;;  %v233_v7 = vld [vmem:[%s790_s20 + $0x38] sm:$0xff]  ;;  %v235_v8 = vld [vmem:[%s790_s20 + $0x40] sm:$0xff] }
  0x16   : > { %232 = vst [vmem:[%s795_s21 + $0x30] sm:$0xff] %v231_v6  ;;  %234 = vst [vmem:[%s795_s21 + $0x38] sm:$0xff] %v233_v7  ;;  %v237_v9 = vld [vmem:[%s790_s20 + $0x48] sm:$0xff]  ;;  %v239_v10 = vld [vmem:[%s790_s20 + $0x50] sm:$0xff] }
  0x17   : > { %236 = vst [vmem:[%s795_s21 + $0x40] sm:$0xff] %v235_v8  ;;  %v241_v11 = vld [vmem:[%s790_s20 + $0x58] sm:$0xff]  ;;  %238 = vst [vmem:[%s795_s21 + $0x48] sm:$0xff] %v237_v9  ;;  %v243_v12 = vld [vmem:[%s790_s20 + $0x60] sm:$0xff] }
  0x18   : > { %240 = vst [vmem:[%s795_s21 + $0x50] sm:$0xff] %v239_v10  ;;  %242 = vst [vmem:[%s795_s21 + $0x58] sm:$0xff] %v241_v11  ;;  %v245_v13 = vld [vmem:[%s790_s20 + $0x68] sm:$0xff]  ;;  %v247_v14 = vld [vmem:[%s790_s20 + $0x70] sm:$0xff] }
  0x19   : > { %244 = vst [vmem:[%s795_s21 + $0x60] sm:$0xff] %v243_v12  ;;  %246 = vst [vmem:[%s795_s21 + $0x68] sm:$0xff] %v245_v13  ;;  %v249_v15 = vld [vmem:[%s790_s20 + $0x78] sm:$0xff]  ;;  %v251_v16 = vld [vmem:[%s790_s20 + $0x80] sm:$0xff] }
  0x1a   : > { %248 = vst [vmem:[%s795_s21 + $0x70] sm:$0xff] %v247_v14  ;;  %v253_v17 = vld [vmem:[%s790_s20 + $0x88] sm:$0xff]  ;;  %250 = vst [vmem:[%s795_s21 + $0x78] sm:$0xff] %v249_v15  ;;  %v255_v18 = vld [vmem:[%s790_s20 + $0x90] sm:$0xff] }
  0x1b   : > { %252 = vst [vmem:[%s795_s21 + $0x80] sm:$0xff] %v251_v16  ;;  %254 = vst [vmem:[%s795_s21 + $0x88] sm:$0xff] %v253_v17  ;;  %v257_v19 = vld [vmem:[%s790_s20 + $0x98] sm:$0xff]  ;;  %v259_v20 = vld [vmem:[%s790_s20 + $0xa0] sm:$0xff] }
  0x1c   : > { %256 = vst [vmem:[%s795_s21 + $0x90] sm:$0xff] %v255_v18  ;;  %258 = vst [vmem:[%s795_s21 + $0x98] sm:$0xff] %v257_v19  ;;  %v261_v21 = vld [vmem:[%s790_s20 + $0xa8] sm:$0xff]  ;;  %v263_v22 = vld [vmem:[%s790_s20 + $0x160] sm:$0xff] }
  0x1d   : > { %260 = vst [vmem:[%s795_s21 + $0xa0] sm:$0xff] %v259_v20  ;;  %v265_v23 = vld [vmem:[%s790_s20 + $0x168] sm:$0xff]  ;;  %262 = vst [vmem:[%s795_s21 + $0xa8] sm:$0xff] %v261_v21  ;;  %v267_v24 = vld [vmem:[%s790_s20 + $0x170] sm:$0xff] }
  0x1e   : > { %264 = vst [vmem:[%s795_s21 + $0xb0] sm:$0xff] %v263_v22  ;;  %266 = vst [vmem:[%s795_s21 + $0xb8] sm:$0xff] %v265_v23  ;;  %v269_v25 = vld [vmem:[%s790_s20 + $0x178] sm:$0xff]  ;;  %v271_v26 = vld [vmem:[%s790_s20 + $0x180] sm:$0xff] }
  0x1f   : > { %268 = vst [vmem:[%s795_s21 + $0xc0] sm:$0xff] %v267_v24  ;;  %270 = vst [vmem:[%s795_s21 + $0xc8] sm:$0xff] %v269_v25  ;;  %v273_v27 = vld [vmem:[%s790_s20 + $0x188] sm:$0xff]  ;;  %v275_v28 = vld [vmem:[%s790_s20 + $0x190] sm:$0xff] }
  0x20   : > { %272 = vst [vmem:[%s795_s21 + $0xd0] sm:$0xff] %v271_v26  ;;  %v277_v29 = vld [vmem:[%s790_s20 + $0x198] sm:$0xff]  ;;  %274 = vst [vmem:[%s795_s21 + $0xd8] sm:$0xff] %v273_v27  ;;  %v279_v30 = vld [vmem:[%s790_s20 + $0x1a0] sm:$0xff] }
  0x21   : > { %276 = vst [vmem:[%s795_s21 + $0xe0] sm:$0xff] %v275_v28  ;;  %278 = vst [vmem:[%s795_s21 + $0xe8] sm:$0xff] %v277_v29  ;;  %v281_v31 = vld [vmem:[%s790_s20 + $0x1a8] sm:$0xff]  ;;  %v283_v32 = vld [vmem:[%s790_s20 + $0x1b0] sm:$0xff] }
  0x22   : > { %280 = vst [vmem:[%s795_s21 + $0xf0] sm:$0xff] %v279_v30  ;;  %282 = vst [vmem:[%s795_s21 + $0xf8] sm:$0xff] %v281_v31  ;;  %v285_v33 = vld [vmem:[%s790_s20 + $0x1b8] sm:$0xff]  ;;  %v287_v34 = vld [vmem:[%s790_s20 + $0x1c0] sm:$0xff] }
  0x23   : > { %284 = vst [vmem:[%s795_s21 + $0x100] sm:$0xff] %v283_v32  ;;  %v289_v35 = vld [vmem:[%s790_s20 + $0x1c8] sm:$0xff]  ;;  %286 = vst [vmem:[%s795_s21 + $0x108] sm:$0xff] %v285_v33  ;;  %v291_v36 = vld [vmem:[%s790_s20 + $0x1d0] sm:$0xff] }
  0x24   : > { %288 = vst [vmem:[%s795_s21 + $0x110] sm:$0xff] %v287_v34  ;;  %290 = vst [vmem:[%s795_s21 + $0x118] sm:$0xff] %v289_v35  ;;  %v293_v37 = vld [vmem:[%s790_s20 + $0x1d8] sm:$0xff]  ;;  %v295_v38 = vld [vmem:[%s790_s20 + $0x1e0] sm:$0xff] }
  0x25   : > { %292 = vst [vmem:[%s795_s21 + $0x120] sm:$0xff] %v291_v36  ;;  %294 = vst [vmem:[%s795_s21 + $0x128] sm:$0xff] %v293_v37  ;;  %v297_v39 = vld [vmem:[%s790_s20 + $0x1e8] sm:$0xff]  ;;  %v299_v40 = vld [vmem:[%s790_s20 + $0x1f0] sm:$0xff] }
  0x26   : > { %296 = vst [vmem:[%s795_s21 + $0x130] sm:$0xff] %v295_v38  ;;  %v301_v41 = vld [vmem:[%s790_s20 + $0x1f8] sm:$0xff]  ;;  %298 = vst [vmem:[%s795_s21 + $0x138] sm:$0xff] %v297_v39  ;;  %v303_v42 = vld [vmem:[%s790_s20 + $0x200] sm:$0xff] }
  0x27   : > { %300 = vst [vmem:[%s795_s21 + $0x140] sm:$0xff] %v299_v40  ;;  %302 = vst [vmem:[%s795_s21 + $0x148] sm:$0xff] %v301_v41  ;;  %v305_v43 = vld [vmem:[%s790_s20 + $0x208] sm:$0xff] }
  0x28   : > { %304 = vst [vmem:[%s795_s21 + $0x150] sm:$0xff] %v303_v42  ;;  %306 = vst [vmem:[%s795_s21 + $0x158] sm:$0xff] %v305_v43 }
  0x29 PF: > { %p626_p6 = scmp.ge.s32.totalorder %s734_s10, 1  ;;  %p311_p7 = scmp.lt.s32.totalorder %s734_s10, 3 }
  0x2b   : > { %p312_p8 = pnand %p626_p6, %p311_p7 }
  0x2c   : > { %s318_s22 = sand.u32 (!%p312_p8), 1, %s718_s6   ;;  %s736_s25 = smov (!%p312_p8), 49   ;;  %vm485_vm0 = vcmask (!%p312_p8), 400384   ;;  %vm508_vm1 = vcmask (!%p312_p8), 801792  }
  0x2d   : > { %315 = sbr.rel (%p312_p8) target bundleno = 207 (0xcf), region = 58 }
  0x2e   : > { %s654_s23 = smul.u32 (!%p312_p8), 352, %s318_s22 }
  0x2f   : > { %s342_s26 = smul.u32 (!%p312_p8), 22, %s726_s8 }
  0x30   : > { %s885_s24 = scalar_lea.vmem (!%p312_p8), [#allocation2], %s654_s23 }
  0x31   : > { %v630_v44 = vld [vmem:[%s885_s24 + $0xc0] sm:$0xff] (!%p312_p8)  ;;  %v628_v45 = vld [vmem:[%s885_s24 + $0xb0] sm:$0xff] (!%p312_p8)  ;;  %v631_v46 = vld [vmem:[%s885_s24 + $0xc8] sm:$0xff] (!%p312_p8)  ;;  %p345_p9 = scmp.lt.s32.totalorder (!%p312_p8), %s342_s26, 43 }
  0x32   : > { %423 = vrot.lane.b32.xlu1 (!%p312_p8), %v630_v44, %s736_s25  ;;  %419 = vrot.lane.b32.xlu0 (!%p312_p8), %v628_v45, %s736_s25  ;;  %v629_v47 = vld [vmem:[%s885_s24 + $0xb8] sm:$0xff] (!%p312_p8)  ;;  %v632_v49 = vld [vmem:[%s885_s24 + $0xd0] sm:$0xff] (!%p312_p8) }
  0x33   : > { %v633_v48 = vld [vmem:[%s885_s24 + $0xd8] sm:$0xff] (!%p312_p8)  ;;  %v635_v50 = vld [vmem:[%s885_s24 + $0xe8] sm:$0xff] (!%p312_p8)  ;;  %v634_v51 = vld [vmem:[%s885_s24 + $0xe0] sm:$0xff] (!%p312_p8) }
  0x34   : > { %v637_v52 = vld [vmem:[%s885_s24 + $0xf8] sm:$0xff]  ;;  %v636_v53 = vld [vmem:[%s885_s24 + $0xf0] sm:$0xff]  ;;  %v639_v54 = vld [vmem:[%s885_s24 + $0x108] sm:$0xff]  ;;  %s1049_s26 = smov (!%p345_p9, %s342_s26), 43 }
  0x35   : > { %v638_v55 = vld [vmem:[%s885_s24 + $0x100] sm:$0xff]  ;;  %v641_v56 = vld [vmem:[%s885_s24 + $0x118] sm:$0xff]  ;;  %v640_v57 = vld [vmem:[%s885_s24 + $0x110] sm:$0xff]  ;;  %s627_s27 = sshll.u32 %s1049_s26, 3 }
  0x36   : > { %425 = vrot.lane.b32.xlu1 %v631_v46, %s736_s25  ;;  %421 = vrot.lane.b32.xlu0 %v629_v47, %s736_s25  ;;  %v643_v58 = vld [vmem:[%s885_s24 + $0x128] sm:$0xff]  ;;  %v642_v59 = vld [vmem:[%s885_s24 + $0x120] sm:$0xff]  ;;  %s937_s30 = scalar_lea.vmem %s1041_s1, %s627_s27 }
  0x37   : > { %v645_v60 = vld [vmem:[%s885_s24 + $0x138] sm:$0xff]  ;;  %v644_v61 = vld [vmem:[%s885_s24 + $0x130] sm:$0xff]  ;;  %v647_v62 = vld [vmem:[%s885_s24 + $0x148] sm:$0xff] }
  0x38   : > { %v646_v63 = vld [vmem:[%s885_s24 + $0x140] sm:$0xff]  ;;  %v649_v0 = vld [vmem:[%s885_s24 + $0x158] sm:$0xff]  ;;  %v648_v1 = vld [vmem:[%s885_s24 + $0x150] sm:$0xff] }
  0x39   : > { %v354_v2 = vld [vmem:[%s885_s24 + $0x10] sm:$0xff]  ;;  %v352_v3 = vld [vmem:[%s885_s24] sm:$0xff]  ;;  %v355_v8 = vld [vmem:[%s885_s24 + $0x18] sm:$0xff] }
  0x3a   : > { %429 = vrot.lane.b32.xlu1 %v633_v48, %s736_s25  ;;  %427 = vrot.lane.b32.xlu0 %v632_v49, %s736_s25  ;;  %v353_v9 = vld [vmem:[%s885_s24 + $0x8] sm:$0xff]  ;;  %v356_v15 = vld [vmem:[%s885_s24 + $0x20] sm:$0xff] }
  0x3b   : > { %v357_v14 = vld [vmem:[%s885_s24 + $0x28] sm:$0xff]  ;;  %v359_v20 = vld [vmem:[%s885_s24 + $0x38] sm:$0xff]  ;;  %v358_v21 = vld [vmem:[%s885_s24 + $0x30] sm:$0xff] }
  0x3c   : > { %v361_v26 = vld [vmem:[%s885_s24 + $0x48] sm:$0xff]  ;;  %v360_v27 = vld [vmem:[%s885_s24 + $0x40] sm:$0xff]  ;;  %v363_v32 = vld [vmem:[%s885_s24 + $0x58] sm:$0xff] }
  0x3d   : > { %v362_v33 = vld [vmem:[%s885_s24 + $0x50] sm:$0xff]  ;;  %v365_v38 = vld [vmem:[%s885_s24 + $0x68] sm:$0xff]  ;;  %v364_v39 = vld [vmem:[%s885_s24 + $0x60] sm:$0xff] }
  0x3e   : > { %433 = vrot.lane.b32.xlu1 %v635_v50, %s736_s25  ;;  %431 = vrot.lane.b32.xlu0 %v634_v51, %s736_s25  ;;  %v367_v44 = vld [vmem:[%s885_s24 + $0x78] sm:$0xff]  ;;  %v366_v45 = vld [vmem:[%s885_s24 + $0x70] sm:$0xff] }
  0x3f   : > { %v369_v50 = vld [vmem:[%s885_s24 + $0x88] sm:$0xff]  ;;  %v368_v51 = vld [vmem:[%s885_s24 + $0x80] sm:$0xff] }
  0x42   : > { %437 = vrot.lane.b32.xlu1 %v637_v52, %s736_s25  ;;  %435 = vrot.lane.b32.xlu0 %v636_v53, %s736_s25 }
  0x46   : > { %441 = vrot.lane.b32.xlu1 %v639_v54, %s736_s25  ;;  %439 = vrot.lane.b32.xlu0 %v638_v55, %s736_s25 }
  0x4a   : > { %445 = vrot.lane.b32.xlu1 %v641_v56, %s736_s25  ;;  %443 = vrot.lane.b32.xlu0 %v640_v57, %s736_s25  ;;  %v371_v56 = vld [vmem:[%s885_s24 + $0x98] sm:$0xff]  ;;  %v370_v57 = vld [vmem:[%s885_s24 + $0x90] sm:$0xff] }
  0x4e   : > { %449 = vrot.lane.b32.xlu1 %v643_v58, %s736_s25  ;;  %447 = vrot.lane.b32.xlu0 %v642_v59, %s736_s25 }
  0x52   : > { %453 = vrot.lane.b32.xlu1 %v645_v60, %s736_s25  ;;  %451 = vrot.lane.b32.xlu0 %v644_v61, %s736_s25 }
  0x56   : > { %457 = vrot.lane.b32.xlu1 %v647_v62, %s736_s25  ;;  %455 = vrot.lane.b32.xlu0 %v646_v63, %s736_s25  ;;  %v373_v62 = vld [vmem:[%s885_s24 + $0xa8] sm:$0xff]  ;;  %v372_v63 = vld [vmem:[%s885_s24 + $0xa0] sm:$0xff] }
  0x5a   : > { %461 = vrot.lane.b32.xlu1 %v649_v0, %s736_s25  ;;  %459 = vrot.lane.b32.xlu0 %v648_v1, %s736_s25 }
  0xa4   : > { %v424_v4 = vpop.permute.xlu1 %423  ;;  %v420_v5 = vpop.permute.xlu0 %419 }
  0xa5   : > { %v488_v6 = vsel %vm485_vm0, %v354_v2, %v424_v4  ;;  %v486_v7 = vsel %vm485_vm0, %v352_v3, %v420_v5 }
  0xa6   : > { %511 = vst.msk [vmem:[%s937_s30 + $0x10] sm:$0xff] %vm508_vm1, %v488_v6  ;;  %509 = vst.msk [vmem:[%s937_s30] sm:$0xff] %vm508_vm1, %v486_v7 }
  0xa8   : > { %v426_v10 = vpop.permute.xlu1 %425  ;;  %v422_v11 = vpop.permute.xlu0 %421 }
  0xa9   : > { %v489_v12 = vsel %vm485_vm0, %v355_v8, %v426_v10  ;;  %v487_v13 = vsel %vm485_vm0, %v353_v9, %v422_v11 }
  0xaa   : > { %512 = vst.msk [vmem:[%s937_s30 + $0x18] sm:$0xff] %vm508_vm1, %v489_v12  ;;  %510 = vst.msk [vmem:[%s937_s30 + $0x8] sm:$0xff] %vm508_vm1, %v487_v13 }
  0xac   : > { %v430_v16 = vpop.permute.xlu1 %429  ;;  %v428_v17 = vpop.permute.xlu0 %427 }
  0xad   : > { %v491_v18 = vsel %vm485_vm0, %v357_v14, %v430_v16  ;;  %v490_v19 = vsel %vm485_vm0, %v356_v15, %v428_v17 }
  0xae   : > { %514 = vst.msk [vmem:[%s937_s30 + $0x28] sm:$0xff] %vm508_vm1, %v491_v18  ;;  %513 = vst.msk [vmem:[%s937_s30 + $0x20] sm:$0xff] %vm508_vm1, %v490_v19 }
  0xb0   : > { %v434_v22 = vpop.permute.xlu1 %433  ;;  %v432_v23 = vpop.permute.xlu0 %431 }
  0xb1   : > { %v493_v24 = vsel %vm485_vm0, %v359_v20, %v434_v22  ;;  %v492_v25 = vsel %vm485_vm0, %v358_v21, %v432_v23 }
  0xb2   : > { %516 = vst.msk [vmem:[%s937_s30 + $0x38] sm:$0xff] %vm508_vm1, %v493_v24  ;;  %515 = vst.msk [vmem:[%s937_s30 + $0x30] sm:$0xff] %vm508_vm1, %v492_v25 }
  0xb4   : > { %v438_v28 = vpop.permute.xlu1 %437  ;;  %v436_v29 = vpop.permute.xlu0 %435 }
  0xb5   : > { %v495_v30 = vsel %vm485_vm0, %v361_v26, %v438_v28  ;;  %v494_v31 = vsel %vm485_vm0, %v360_v27, %v436_v29 }
  0xb6   : > { %518 = vst.msk [vmem:[%s937_s30 + $0x48] sm:$0xff] %vm508_vm1, %v495_v30  ;;  %517 = vst.msk [vmem:[%s937_s30 + $0x40] sm:$0xff] %vm508_vm1, %v494_v31 }
  0xb8   : > { %v442_v34 = vpop.permute.xlu1 %441  ;;  %v440_v35 = vpop.permute.xlu0 %439 }
  0xb9   : > { %v497_v36 = vsel %vm485_vm0, %v363_v32, %v442_v34  ;;  %v496_v37 = vsel %vm485_vm0, %v362_v33, %v440_v35 }
  0xba   : > { %520 = vst.msk [vmem:[%s937_s30 + $0x58] sm:$0xff] %vm508_vm1, %v497_v36  ;;  %519 = vst.msk [vmem:[%s937_s30 + $0x50] sm:$0xff] %vm508_vm1, %v496_v37 }
  0xbc   : > { %v446_v40 = vpop.permute.xlu1 %445  ;;  %v444_v41 = vpop.permute.xlu0 %443 }
  0xbd   : > { %v499_v42 = vsel %vm485_vm0, %v365_v38, %v446_v40  ;;  %v498_v43 = vsel %vm485_vm0, %v364_v39, %v444_v41 }
  0xbe   : > { %522 = vst.msk [vmem:[%s937_s30 + $0x68] sm:$0xff] %vm508_vm1, %v499_v42  ;;  %521 = vst.msk [vmem:[%s937_s30 + $0x60] sm:$0xff] %vm508_vm1, %v498_v43 }
  0xc0   : > { %v450_v46 = vpop.permute.xlu1 %449  ;;  %v448_v47 = vpop.permute.xlu0 %447 }
  0xc1   : > { %v501_v48 = vsel %vm485_vm0, %v367_v44, %v450_v46  ;;  %v500_v49 = vsel %vm485_vm0, %v366_v45, %v448_v47 }
  0xc2   : > { %524 = vst.msk [vmem:[%s937_s30 + $0x78] sm:$0xff] %vm508_vm1, %v501_v48  ;;  %523 = vst.msk [vmem:[%s937_s30 + $0x70] sm:$0xff] %vm508_vm1, %v500_v49 }
  0xc4   : > { %v454_v52 = vpop.permute.xlu1 %453  ;;  %v452_v53 = vpop.permute.xlu0 %451 }
  0xc5   : > { %v503_v54 = vsel %vm485_vm0, %v369_v50, %v454_v52  ;;  %v502_v55 = vsel %vm485_vm0, %v368_v51, %v452_v53 }
  0xc6   : > { %526 = vst.msk [vmem:[%s937_s30 + $0x88] sm:$0xff] %vm508_vm1, %v503_v54  ;;  %525 = vst.msk [vmem:[%s937_s30 + $0x80] sm:$0xff] %vm508_vm1, %v502_v55 }
  0xc8   : > { %v458_v58 = vpop.permute.xlu1 %457  ;;  %v456_v59 = vpop.permute.xlu0 %455 }
  0xc9   : > { %v505_v60 = vsel %vm485_vm0, %v371_v56, %v458_v58  ;;  %v504_v61 = vsel %vm485_vm0, %v370_v57, %v456_v59 }
  0xca   : > { %528 = vst.msk [vmem:[%s937_s30 + $0x98] sm:$0xff] %vm508_vm1, %v505_v60  ;;  %527 = vst.msk [vmem:[%s937_s30 + $0x90] sm:$0xff] %vm508_vm1, %v504_v61 }
  0xcc   : > { %v462_v0 = vpop.permute.xlu1 %461  ;;  %v460_v1 = vpop.permute.xlu0 %459 }
  0xcd   : > { %v507_v2 = vsel %vm485_vm0, %v373_v62, %v462_v0  ;;  %v506_v3 = vsel %vm485_vm0, %v372_v63, %v460_v1 }
  0xce   : > { %530 = vst.msk [vmem:[%s937_s30 + $0xa8] sm:$0xff] %vm508_vm1, %v507_v2  ;;  %529 = vst.msk [vmem:[%s937_s30 + $0xa0] sm:$0xff] %vm508_vm1, %v506_v3 }
  0xcf PF: > { %s11_s10 = sadd.s32 1, %s734_s10   ;;  %s1042_s6 = smov %s722_s7 }
  0xd0   : > { %p8_p10 = scmp.ge.s32.totalorder %s11_s10, 4   ;;  %s1043_s7 = smov %s782_s14 }
  0xd1   : > { %s1044_s8 = smov %s730_s9  ;;  %s1045_s9 = smov %s1047_s11 }
  0xd2   :  { %10 = sbr.rel (!%p8_p10) target bundleno = 3 (0x3), region = 98 }

</bundles_post_ra>
